<compile_context>
chip_gen: v5e
topology: v5e:2x2
jax: 0.10.0
libtpu: 0.0.40
codegen_flags: <defaults>
</compile_context>

<pallas_src>
import functools

import jax
import jax.numpy as jnp
from jax.experimental import pallas as pl
from jax.experimental.pallas import tpu as pltpu


def autopad(k, p=None, d=1):
    """Same-padding helper, mirrors models/common.py::autopad for square k."""
    if d > 1:
        k = d * (k - 1) + 1
    if p is None:
        p = k // 2
    return p


def _conv_bn_silu_kernel(x_ref, w_ref, bias_ref, o_ref, *, k, stride, dilation,
                         apply_act):
    """One (batch, cout-tile, row-tile) grid step.

    x_ref:    (1, Hp, Wp, Cin)   bf16 zero-padded NHWC image (resident per batch)
    w_ref:    (k*k*Cin, TC)      bf16 BN-scale-folded weight, one Cout tile
    bias_ref: (1, TC)            f32 folded BN bias = beta - mean * scale
    o_ref:    (1, TH, Wo, TC)    bf16 output row-tile (lane-dense TC)
    """
    TH, Wo, TC = o_ref.shape[1], o_ref.shape[2], o_ref.shape[3]
    Cin = x_ref.shape[3]

    h_tile = pl.program_id(2)
    row0 = h_tile * (TH * stride)
    rows_in = (TH - 1) * stride + dilation * (k - 1) + 1
    # Halo'd row window of the resident padded image (dynamic start, static size).
    xwin = x_ref[0, pl.ds(row0, rows_in), :, :]          # (rows_in, Wp, Cin) bf16

    # im2col: gather the k*k shifted taps along the channel (lane) axis so the
    # whole step is ONE MXU matmul with contraction depth k*k*Cin.
    cols = []
    for kh in range(k):
        for kw in range(k):
            h0 = kh * dilation
            w0 = kw * dilation
            if stride == 1:
                cols.append(xwin[h0:h0 + TH, w0:w0 + Wo, :])
            else:
                # TODO(synk): de-stride the window once per step instead of
                # per-tap strided slices when s>1 layers are hot.
                cols.append(jax.lax.slice(
                    xwin,
                    (h0, w0, 0),
                    (h0 + (TH - 1) * stride + 1, w0 + (Wo - 1) * stride + 1, Cin),
                    (stride, stride, 1)))
    if len(cols) == 1:
        patch = cols[0].reshape(TH * Wo, Cin)
    else:
        patch = jnp.concatenate(cols, axis=-1).reshape(TH * Wo, k * k * Cin)

    acc = jnp.dot(patch, w_ref[...], preferred_element_type=jnp.float32)

    # Epilogue: folded-BN bias + SiLU in f32, single lane-dense store.
    y = acc + bias_ref[...]
    if apply_act:
        y = y * jax.nn.sigmoid(y)
    o_ref[0] = y.reshape(TH, Wo, TC).astype(o_ref.dtype)


def _pick_row_tile(Ho, Wo, other_parallel):
    """Output-row tile: ~512-1024 output pixels per step (good MXU M, bounded VMEM)."""
    target_px = 1024
    th = max(1, min(Ho, target_px // max(Wo, 1)))
    # v7x has 2 TensorCores: keep >= 2 grid steps when batch/Cout give none
    # (also preserves double-buffering overlap).
    if other_parallel <= 1 and Ho >= 2:
        th = min(th, -(-Ho // 2))
    return th


def _vmem_limit_bytes():
    """~3/4 of physical VMEM: ~96 MiB on 128-MiB v5e/v6e, 48 MiB on 64-MiB v7x."""
    try:
        cap = pltpu.get_tpu_info().vmem_capacity_bytes
    except Exception:  # conservative fallback (v7x-sized)
        cap = 64 * 1024 * 1024
    return int(max(32 * 1024 * 1024, min(cap * 3 // 4, 110 * 1024 * 1024)))


def _image_block_spec(Hp_pad, Wp, C1):
    idx = lambda n, c, h: (n, 0, 0, 0)
    shape = (1, Hp_pad, Wp, C1)
    # The image block's index changes only with n; for large maps don't
    # double-buffer the dominant VMEM consumer.
    if Hp_pad * Wp * C1 * 2 > (8 << 20):
        try:
            return pl.BlockSpec(shape, idx, pipeline_mode=pl.Buffered(1))
        except (TypeError, AttributeError):
            pass
    return pl.BlockSpec(shape, idx)


def conv_bn_silu(x_nchw, w_oihw, gamma, beta, running_mean, running_var, *,
                 k, s=1, p=None, g=1, d=1, eps=1e-5, act=True, row_tile=None,
                 out_dtype=jnp.bfloat16):
    """Conv.forward(x) = SiLU(BN(Conv2d(x)))  (groups=1, bias=False, BN eval mode)."""
    if g != 1:
        # TODO(synk): grouped / depthwise conv not implemented.
        raise NotImplementedError("groups > 1 not supported")

    N, C1, H, W = x_nchw.shape
    C2 = w_oihw.shape[0]
    pad = autopad(k, p, d)

    Ho = (H + 2 * pad - d * (k - 1) - 1) // s + 1
    Wo = (W + 2 * pad - d * (k - 1) - 1) // s + 1

    # Lane-dense Cout tile: 128, or 256 to fill the 256-wide MXU N on v6e/v7x.
    # TODO(synk): gate TC on chip generation (keep 128 on v5e's 4x128^2 MXUs).
    TC = 256 if C2 > 128 else 128
    C2p = pl.cdiv(C2, TC) * TC
    Ct = C2p // TC

    # Output-row tile; Ho need not be divisible (bottom rows are padded & sliced off).
    if row_tile is None:
        TH = _pick_row_tile(Ho, Wo, N * Ct)
    else:
        TH = max(1, min(int(row_tile), Ho))
    Ht = pl.cdiv(Ho, TH)
    Ho_pad = Ht * TH

    # ---- glue: layout / padding / BN folding (plain JAX) ----
    x_nhwc = jnp.transpose(x_nchw, (0, 2, 3, 1)).astype(jnp.bfloat16)
    Hp_need = (Ho_pad - 1) * s + d * (k - 1) + 1          # rows the last tile reads
    pad_bottom = pad + max(0, Hp_need - (H + 2 * pad))
    x_pad = jnp.pad(x_nhwc, ((0, 0), (pad, pad_bottom), (pad, pad), (0, 0)))
    Hp_pad, Wp = H + pad + pad_bottom, W + 2 * pad

    # Fold BN (eval) scale into the weights; keep only the bias for the epilogue.
    scale = (gamma / jnp.sqrt(running_var + eps)).astype(jnp.float32)
    bias = (beta - running_mean * scale).astype(jnp.float32)
    w_hwio = jnp.transpose(w_oihw, (2, 3, 1, 0)).astype(jnp.float32)     # (k,k,Cin,C2)
    w_hwio = w_hwio * scale[None, None, None, :]
    w_hwio = jnp.pad(w_hwio, ((0, 0), (0, 0), (0, 0), (0, C2p - C2)))
    w2d = w_hwio.reshape(k * k * C1, C2p).astype(jnp.bfloat16)           # (k*k*Cin, C2p)
    bias2 = jnp.pad(bias.reshape(1, C2), ((0, 0), (0, C2p - C2)))

    kernel = functools.partial(_conv_bn_silu_kernel, k=k, stride=s, dilation=d,
                               apply_act=bool(act))

    out_nhwc = pl.pallas_call(
        kernel,
        out_shape=jax.ShapeDtypeStruct((N, Ho_pad, Wo, C2p), out_dtype),
        grid_spec=pltpu.PrefetchScalarGridSpec(
            num_scalar_prefetch=0,
            # Batch outermost -> the resident image is fetched once per image;
            # Cout tile middle (weight/bias tiles are tiny); row tiles innermost.
            grid=(N, Ct, Ht),
            in_specs=[
                _image_block_spec(Hp_pad, Wp, C1),
                pl.BlockSpec((k * k * C1, TC), lambda n, c, h: (0, c)),
                pl.BlockSpec((1, TC), lambda n, c, h: (0, c)),
            ],
            out_specs=pl.BlockSpec((1, TH, Wo, TC), lambda n, c, h: (n, h, 0, c)),
        ),
        compiler_params=pltpu.CompilerParams(
            # Full contraction per step -> all axes independent; shard freely
            # across v7x's two TensorCores even at batch == 1.
            dimension_semantics=("parallel", "parallel", "parallel"),
            vmem_limit_bytes=_vmem_limit_bytes()),
    )(x_pad, w2d, bias2)

    # TODO(synk): in a full network keep NHWC/bf16 between layers and drop this.
    out_nhwc = out_nhwc[:, :Ho, :, :C2]                   # drop row/lane padding
    return jnp.transpose(out_nhwc, (0, 3, 1, 2))          # back to NCHW


def _reference(x_nchw, w_oihw, gamma, beta, mean, var, *, k, s, p, d, eps=1e-5):
    pad = autopad(k, p, d)
    y = jax.lax.conv_general_dilated(
        x_nchw.astype(jnp.float32), w_oihw.astype(jnp.float32),
        window_strides=(s, s), padding=[(pad, pad), (pad, pad)],
        rhs_dilation=(d, d),
        dimension_numbers=("NCHW", "OIHW", "NCHW"))
    scale = gamma / jnp.sqrt(var + eps)
    bias = beta - mean * scale
    y = y * scale[None, :, None, None] + bias[None, :, None, None]
    return y * jax.nn.sigmoid(y)


if __name__ == "__main__":
    key = jax.random.PRNGKey(0)
    k_x, k_w, k_g, k_b, k_m, k_v = jax.random.split(key, 6)

    # Small shapes: batch=2, c1=4, c2=8, spatial=16.
    N, C1, C2, H, W = 2, 4, 8, 16, 16

    x = jax.random.normal(k_x, (N, C1, H, W), jnp.float32)
    gamma = 1.0 + 0.1 * jax.random.normal(k_g, (C2,), jnp.float32)
    beta = 0.1 * jax.random.normal(k_b, (C2,), jnp.float32)
    running_mean = 0.1 * jax.random.normal(k_m, (C2,), jnp.float32)
    running_var = jnp.abs(jax.random.normal(k_v, (C2,), jnp.float32)) + 0.5

    # bf16 MXU inputs / bf16 output vs f32 reference -> loosened tolerance.
    ATOL = RTOL = 5e-2

    # 3x3 conv, stride 1; row_tile=5 (does not divide Ho=16) exercises the
    # padded-row-tile path and the deep-K im2col matmul.
    w3 = jax.random.normal(k_w, (C2, C1, 3, 3), jnp.float32) * 0.1
    out3 = conv_bn_silu(x, w3, gamma, beta, running_mean, running_var,
                        k=3, s=1, p=None, d=1, row_tile=5)
    out3 = jax.block_until_ready(out3)
    ref3 = _reference(x, w3, gamma, beta, running_mean, running_var,
                      k=3, s=1, p=None, d=1)
    assert out3.shape == ref3.shape == (N, C2, H, W)
    assert jnp.allclose(out3.astype(jnp.float32), ref3, atol=ATOL, rtol=RTOL), \
        float(jnp.max(jnp.abs(out3.astype(jnp.float32) - ref3)))

    # 1x1 pointwise conv (common in this module), default row-tile heuristic.
    w1 = jax.random.normal(k_w, (C2, C1, 1, 1), jnp.float32) * 0.1
    out1 = conv_bn_silu(x, w1, gamma, beta, running_mean, running_var,
                        k=1, s=1, p=None, d=1)
    out1 = jax.block_until_ready(out1)
    ref1 = _reference(x, w1, gamma, beta, running_mean, running_var,
                      k=1, s=1, p=None, d=1)
    assert out1.shape == ref1.shape == (N, C2, H, W)
    assert jnp.allclose(out1.astype(jnp.float32), ref1, atol=ATOL, rtol=RTOL), \
        float(jnp.max(jnp.abs(out1.astype(jnp.float32) - ref1)))

    print("KERNEL_OK")
</pallas_src>

<mosaic_0001>
module attributes {stable_mosaic.version = 11 : i64} {
  func.func @_conv_bn_silu_kernel(%arg0: i32, %arg1: i32, %arg2: i32, %arg3: memref<1x22x18x4xbf16, #tpu.memory_space<vmem>>, %arg4: memref<36x128xbf16, #tpu.memory_space<vmem>>, %arg5: memref<1x128xf32, #tpu.memory_space<vmem>>, %arg6: memref<1x5x16x128xbf16, #tpu.memory_space<vmem>>) attributes {dimension_semantics = [#tpu.dimension_semantics<parallel>, #tpu.dimension_semantics<parallel>, #tpu.dimension_semantics<parallel>], iteration_bounds = array<i64: 2, 1, 4>, scalar_prefetch = 0 : i64, scratch_operands = 0 : i64, tpu.core_type = #tpu.core_type<tc>, window_params = [{transform_indices = @transform_0, window_bounds = array<i64: 1, 22, 18, 4>}, {transform_indices = @transform_1, window_bounds = array<i64: 36, 128>}, {transform_indices = @transform_2, window_bounds = array<i64: 1, 128>}, {transform_indices = @transform_3, window_bounds = array<i64: 1, 5, 16, 128>}]} {
    %c5_i32 = arith.constant 5 : i32
    %0 = arith.muli %arg2, %c5_i32 : i32
    %c0 = arith.constant 0 : index
    %1 = arith.index_cast %0 : i32 to index
    %c0_0 = arith.constant 0 : index
    %c0_1 = arith.constant 0 : index
    %2 = vector.load %arg3[%c0, %1, %c0_0, %c0_1] : memref<1x22x18x4xbf16, #tpu.memory_space<vmem>>, vector<1x7x18x4xbf16>
    %3 = vector.shape_cast %2 : vector<1x7x18x4xbf16> to vector<7x18x4xbf16>
    %4 = vector.extract_strided_slice %3 {offsets = [0, 0, 0], sizes = [5, 16, 4], strides = [1, 1, 1]} : vector<7x18x4xbf16> to vector<5x16x4xbf16>
    %5 = vector.extract_strided_slice %3 {offsets = [0, 1, 0], sizes = [5, 16, 4], strides = [1, 1, 1]} : vector<7x18x4xbf16> to vector<5x16x4xbf16>
    %6 = vector.extract_strided_slice %3 {offsets = [0, 2, 0], sizes = [5, 16, 4], strides = [1, 1, 1]} : vector<7x18x4xbf16> to vector<5x16x4xbf16>
    %7 = vector.extract_strided_slice %3 {offsets = [1, 0, 0], sizes = [5, 16, 4], strides = [1, 1, 1]} : vector<7x18x4xbf16> to vector<5x16x4xbf16>
    %8 = vector.extract_strided_slice %3 {offsets = [1, 1, 0], sizes = [5, 16, 4], strides = [1, 1, 1]} : vector<7x18x4xbf16> to vector<5x16x4xbf16>
    %9 = vector.extract_strided_slice %3 {offsets = [1, 2, 0], sizes = [5, 16, 4], strides = [1, 1, 1]} : vector<7x18x4xbf16> to vector<5x16x4xbf16>
    %10 = vector.extract_strided_slice %3 {offsets = [2, 0, 0], sizes = [5, 16, 4], strides = [1, 1, 1]} : vector<7x18x4xbf16> to vector<5x16x4xbf16>
    %11 = vector.extract_strided_slice %3 {offsets = [2, 1, 0], sizes = [5, 16, 4], strides = [1, 1, 1]} : vector<7x18x4xbf16> to vector<5x16x4xbf16>
    %12 = vector.extract_strided_slice %3 {offsets = [2, 2, 0], sizes = [5, 16, 4], strides = [1, 1, 1]} : vector<7x18x4xbf16> to vector<5x16x4xbf16>
    %13 = tpu.concatenate %4, %5, %6, %7, %8, %9, %10, %11, %12 in 2 : vector<5x16x4xbf16>, vector<5x16x4xbf16>, vector<5x16x4xbf16>, vector<5x16x4xbf16>, vector<5x16x4xbf16>, vector<5x16x4xbf16>, vector<5x16x4xbf16>, vector<5x16x4xbf16>, vector<5x16x4xbf16> -> vector<5x16x36xbf16>
    %14 = vector.shape_cast %13 : vector<5x16x36xbf16> to vector<80x36xbf16>
    %c0_2 = arith.constant 0 : index
    %c0_3 = arith.constant 0 : index
    %15 = vector.load %arg4[%c0_2, %c0_3] : memref<36x128xbf16, #tpu.memory_space<vmem>>, vector<36x128xbf16>
    %cst = arith.constant dense<0.000000e+00> : vector<80x128xf32>
    %16 = tpu.matmul %14, %15, %cst {dimension_numbers = #tpu.dot_dimension_numbers<[1], [0], [0], [1], [0, 0, 1, 1], [], []>} : vector<80x36xbf16>, vector<36x128xbf16>, vector<80x128xf32> -> vector<80x128xf32>
    %c0_4 = arith.constant 0 : index
    %c0_5 = arith.constant 0 : index
    %17 = vector.load %arg5[%c0_4, %c0_5] : memref<1x128xf32, #tpu.memory_space<vmem>>, vector<1x128xf32>
    %18 = vector.broadcast %17 : vector<1x128xf32> to vector<80x128xf32>
    %19 = arith.addf %16, %18 : vector<80x128xf32>
    %20 = arith.negf %19 : vector<80x128xf32>
    %21 = math.exp %20 : vector<80x128xf32>
    %cst_6 = arith.constant 1.000000e+00 : f32
    %22 = vector.broadcast %cst_6 : f32 to vector<80x128xf32>
    %23 = arith.addf %22, %21 : vector<80x128xf32>
    %24 = arith.divf %22, %23 : vector<80x128xf32>
    %25 = arith.mulf %19, %24 : vector<80x128xf32>
    %26 = vector.shape_cast %25 : vector<80x128xf32> to vector<5x16x128xf32>
    %27 = arith.truncf %26 : vector<5x16x128xf32> to vector<5x16x128xbf16>
    %c0_7 = arith.constant 0 : index
    %c0_8 = arith.constant 0 : index
    %c0_9 = arith.constant 0 : index
    %c0_10 = arith.constant 0 : index
    %28 = vector.load %arg6[%c0_7, %c0_8, %c0_9, %c0_10] : memref<1x5x16x128xbf16, #tpu.memory_space<vmem>>, vector<1x5x16x128xbf16>
    %29 = vector.shape_cast %28 : vector<1x5x16x128xbf16> to vector<5x16x128xbf16>
    %30 = vector.shape_cast %27 : vector<5x16x128xbf16> to vector<1x5x16x128xbf16>
    tpu.vector_store %arg6[%c0_7, %c0_8, %c0_9, %c0_10], %30 {strides = array<i32>} : memref<1x5x16x128xbf16, #tpu.memory_space<vmem>>, vector<1x5x16x128xbf16>,
    return
  }
  func.func @transform_0(%arg0: i32, %arg1: i32, %arg2: i32) -> (i32, i32, i32, i32) {
    %c0_i32 = arith.constant 0 : i32
    %c0_i32_0 = arith.constant 0 : i32
    %c0_i32_1 = arith.constant 0 : i32
    %c0_i32_2 = arith.constant 0 : i32
    return %arg0, %c0_i32, %c0_i32_0, %c0_i32_1 : i32, i32, i32, i32
  }
  func.func @transform_1(%arg0: i32, %arg1: i32, %arg2: i32) -> (i32, i32) {
    %c0_i32 = arith.constant 0 : i32
    %c0_i32_0 = arith.constant 0 : i32
    return %c0_i32, %arg1 : i32, i32
  }
  func.func @transform_2(%arg0: i32, %arg1: i32, %arg2: i32) -> (i32, i32) {
    %c0_i32 = arith.constant 0 : i32
    %c0_i32_0 = arith.constant 0 : i32
    return %c0_i32, %arg1 : i32, i32
  }
  func.func @transform_3(%arg0: i32, %arg1: i32, %arg2: i32) -> (i32, i32, i32, i32) {
    %c0_i32 = arith.constant 0 : i32
    %c0_i32_0 = arith.constant 0 : i32
    return %arg0, %arg2, %c0_i32, %arg1 : i32, i32, i32, i32
  }
}

</mosaic_0001>

<bundles_post_ra>
// kernel: tpu_custom_call.1
= control target key start
LH: loop header
LB: loop body
LE: loop exit
PB: predicated region body
PF: predicated region fallthrough
CT: control target
= control target key end

     0   :  { %8 = vsyncpa [#allocation3], 0  ;;  %s1737_s0 = inlined_call_operand.vmem [shape: bf16[2,22,18,4], index: 0, kind: input, shape index: {}]   ;;  %s1738_s1 = inlined_call_operand.vmem [shape: bf16[36,128], index: 1, kind: input, shape index: {}]   ;;  %s1739_s2 = inlined_call_operand.vmem [shape: f32[1,128], index: 2, kind: input, shape index: {}]   ;;  %s1740_s3 = inlined_call_operand.hbm [shape: bf16[2,20,16,128], index: 3, kind: output, shape index: {}]  }
   0x1   :  { %10 = vsyncpa [#allocation3 + $0x1], 0  ;;  %s1366_s12 = smov 0   ;;  %s1368_s13 = smov 0  }
   0x2   :  { %s1370_s14 = smov 0   ;;  %s1372_s15 = smov 0  }
   0x3   :  { %s1374_s16 = smov 0   ;;  %s1376_s17 = smov 0  }
   0x4   :  { %s1378_s18 = smov 0   ;;  %s1380_s19 = smov 0  }
   0x5 LB: > { %s1003_s20 = sadd.s32 4294967295, %s1335_s19   ;;  %s1004_s21 = sadd.s32 4294967294, %s1335_s19   ;;  %s1335_s19 = sphi %s1380_s19, %s16_s19   ;;  %s1331_s18 = sphi %s1378_s18, %s1751_s18   ;;  %s1327_s17 = sphi %s1376_s17, %s1750_s17   ;;  %s1323_s16 = sphi %s1374_s16, %s1749_s16   ;;  %s1319_s15 = sphi %s1372_s15, %s1748_s15   ;;  %s1315_s14 = sphi %s1370_s14, %s1747_s14   ;;  %s1311_s13 = sphi %s1368_s13, %s1746_s13   ;;  %s1307_s12 = sphi %s1366_s12, %s1745_s12  }
   0x6   : > { %s28_s22 = sadd.s32 1, %s1327_s17  ;;  %s35_s23 = sadd.s32 1, %s1331_s18 }
   0x7   : > { %p29_p0 = scmp.ge.s32.totalorder %s28_s22, 4  ;;  %p134_p1 = scmp.ne.s32.totalorder %s1315_s14, %s1311_s13 }
   0x8   : > { %p135_p2 = scmp.eq.s32.totalorder %s1003_s20, 7  ;;  %p140_p5 = scmp.ne.s32.totalorder %s1311_s13, %s1307_s12 }
   0x9   : > { %s1753_s22 = smov (%p29_p0, %s28_s22), 0  ;;  %s1755_s23 = smov (!%p29_p0, %s35_s23), %s1331_s18 }
   0xa   : > { %s118_s24 = ssub.s32 %s1327_s17, %s1753_s22  ;;  %p1417_p3 = por %p135_p2, %p134_p1 }
   0xb   : > { %p37_p4 = scmp.ge.s32.totalorder %s1755_s23, 2  ;;  %p141_p6 = scmp.eq.s32.totalorder %s1004_s21, 7 }
   0xc   : > { %p1009_p7 = scmp.ge.s32.totalorder %s1335_s19, 1  ;;  %p180_p9 = scmp.lt.s32.totalorder %s1335_s19, 9 }
   0xd   : > { %s1757_s23 = smov (%p37_p4, %s1755_s23), 0  ;;  %p1426_p8 = por %p141_p6, %p140_p5 }
   0xe   : > { %s117_s27 = ssub.s32 %s1331_s18, %s1757_s23  ;;  %s124_s28 = sadd.s32 1, %s1315_s14 }
   0xf   : > { %s119_s29 = sor.u32 %s118_s24, %s117_s27  ;;  %p181_p10 = pnand %p1009_p7, %p180_p9 }
  0x10   : > { %p122_p11 = scmp.eq.s32.totalorder %s119_s29, 0  ;;  %p211_p12 = scmp.lt.s32.totalorder (!%p181_p10), %s1323_s16, 1 }
  0x11   : > { %184 = sbr.rel (%p181_p10) target bundleno = 428 (0x1ac), region = 32  ;;  %s1337_s11 = smov (!%p181_p10), 12  }
  0x12   : > { %s1435_s30 = scalar_select %p122_p11, %s1315_s14, %s124_s28  }
  0x13   : > { %s1068_s5 = smul.u32 (!%p181_p10), 60, %s1319_s15  ;;  %s1338_s20 = smov (!%p181_p10), 24  }
  0x14   : > { %s1339_s21 = smov (!%p181_p10), 8   ;;  %s1340_s24 = smov (!%p181_p10), 32  }
  0x15   : > { %s1341_s27 = smov (!%p181_p10), 20   ;;  %s1342_s28 = smov (!%p181_p10), 4  }
  0x16   : > { %s212_s4 = scalar_select %p211_p12, %s1323_s16, 1  ;;  %vm361_vm0 = vcmask 1046528   ;;  %vm290_vm1 = vsmask.f32 7424  ;;  %vm616_vm2 = vcmask 1041408   ;;  %vm493_vm3 = vcmask 31744  }
  0x17   : > { %s1343_s29 = smov 16   ;;  %vm504_vm4 = vcmask 64512   ;;  %vm515_vm5 = vcmask 97280   ;;  %vm526_vm6 = vcmask 130048   ;;  %vm537_vm7 = vcmask 162816  }
  0x18   : > { %s1118_s6 = smul.u32 264, %s212_s4  ;;  %s1344_s4 = smov 28   ;;  %vm548_vm8 = vcmask 195584   ;;  %vm559_vm9 = vcmask 228352   ;;  %vm570_vm10 = vcmask 261120   ;;  %vm605_vm11 = vcmask 293888  }
  0x1a   : > { %s215_s9 = scalar_lea.vmem %s1737_s0, %s1118_s6 }
  0x1b   : > { %s1443_s10 = scalar_lea.vmem %s215_s9, %s1068_s5 }
  0x1c   : > { %v1446_v0 = vld [vmem:[%s1443_s10 + $0x24] sm:$0xff]  ;;  %v1449_v1 = vld [vmem:[%s1443_s10 + $0x18] sm:$0xff]  ;;  %v237_v2 = vld [vmem:[%s1443_s10 + $0x20] sm:$0x1] }
  0x1d   : > { %v282_v3 = vunpack.c.l.b16 %v237_v2  ;;  %v1453_v4 = vld [vmem:[%s1443_s10 + $0x30] sm:$0xff]  ;;  %v243_v5 = vld [vmem:[%s1443_s10 + $0x38] sm:$0x1]  ;;  %v240_v6 = vld [vmem:[%s1443_s10 + $0x2c] sm:$0x1]  ;;  %396 = vrot.lane.b32.xlu1 %v1446_v0, %s1337_s11  ;;  %v318_v8 = vshll.u32 %v1449_v1, 16 }
  0x1e   : > { %v284_v7 = vunpack.c.l.b16 %v243_v5  ;;  %v368_v10 = vrot.slane %v1449_v1, 1  ;;  %v283_v11 = vunpack.c.l.b16 %v240_v6  ;;  %449 = vrot.lane.b32.xlu2 %v1453_v4, %s1338_s20  ;;  %v374_v13 = vrot.slane %v1453_v4, 1  ;;  %v246_v42 = vld [vmem:[%s1443_s10 + $0x44] sm:$0x1]  ;;  %v1074_v44 = vld [vmem:[%s1443_s10 + $0x3c] sm:$0xff]  ;;  %v1075_v5 = vld [vmem:[%s1443_s10 + $0x48] sm:$0xff] }
  0x1f   : > { %v287_v9 = vpack.c.b16 %v282_v3, %v282_v3  ;;  %v316_v14 = vshrl.u32 %v1449_v1, 16  ;;  %v330_v15 = vshll.u32 %v1446_v0, 16  ;;  %v320_v17 = vrot.slane %v318_v8, 1  ;;  %v231_v45 = vld [vmem:[%s1443_s10 + $0x8] sm:$0x1]  ;;  %v1504_v48 = vld [vmem:[%s1443_s10] sm:$0xff] }
  0x20   : > { %v289_v12 = vpack.c.b16 %v284_v7, %v284_v7  ;;  %v288_v19 = vpack.c.b16 %v283_v11, %v283_v11  ;;  %v328_v22 = vshrl.u32 %v1446_v0, 16  ;;  %v371_v26 = vrot.slane %v1446_v0, 1  ;;  %v249_v57 = vld [vmem:[%s1443_s10 + $0x50] sm:$0x1]  ;;  %v234_v61 = vld [vmem:[%s1443_s10 + $0x14] sm:$0x1] }
  0x21   : > { %v369_v16 = vrot.slane %v287_v9, 1  ;;  %v323_v18 = vshll.u32 %v287_v9, 16  ;;  %v332_v23 = vrot.slane %v330_v15, 1  ;;  %v321_v27 = vor.u32 %v320_v17, %v316_v14  ;;  %v1520_v7 = vld [vmem:[%s1443_s10 + $0xc] sm:$0xff] }
  0x22   : > { %v375_v20 = vrot.slane %v289_v12, 1  ;;  %v335_v24 = vshll.u32 %v288_v19, 16  ;;  %v342_v29 = vshll.u32 %v1453_v4, 16  ;;  %v372_v30 = vrot.slane %v288_v19, 1 }
  0x23   : > { %v1467_v21 = vsel %vm361_vm0, %v368_v10, %v369_v16  ;;  %v325_v28 = vrot.slane %v323_v18, 1  ;;  %v333_v31 = vor.u32 %v332_v23, %v328_v22  ;;  %v340_v35 = vshrl.u32 %v1453_v4, 16 }
  0x24   : > { %381 = vrot.lane.b32.xlu0 %v1467_v21, %s1339_s21  ;;  %v376_v25 = vsel %vm361_vm0, %v374_v13, %v375_v20  ;;  %v337_v32 = vrot.slane %v335_v24, 1  ;;  %v1477_v33 = vsel %vm361_vm0, %v371_v26, %v372_v30  ;;  %v344_v36 = vrot.slane %v342_v29, 1 }
  0x25   : > { %487 = vrot.lane.b32.xlu1 %v376_v25, %s1340_s24  ;;  %v1482_v34 = vsel %vm290_vm1, %v321_v27, %v325_v28  ;;  %v347_v37 = vshll.u32 %v289_v12, 16  ;;  %v403_v43 = vunpack.c.l.b16 %v246_v42  ;;  %v408_v47 = vshll.u32 %v1074_v44, 16 }
  0x26   : > { %434 = vrot.lane.b32.xlu2 %v1477_v33, %s1341_s27  ;;  %v1486_v38 = vsel %vm290_vm1, %v333_v31, %v337_v32  ;;  %v345_v39 = vor.u32 %v344_v36, %v340_v35  ;;  %v280_v49 = vunpack.c.l.b16 %v231_v45  ;;  %v406_v50 = vshrl.u32 %v1074_v44, 16 }
  0x27   : > { %v349_v40 = vrot.slane %v347_v37, 1  ;;  %v404_v46 = vpack.c.b16 %v403_v43, %v403_v43  ;;  %v410_v51 = vrot.slane %v408_v47, 1  ;;  %v427_v53 = vrot.slane %v1074_v44, 1 }
  0x28   : > { %v285_v55 = vpack.c.b16 %v280_v49, %v280_v49  ;;  %v294_v56 = vshll.u32 %v1504_v48, 16  ;;  %v292_v62 = vshrl.u32 %v1504_v48, 16  ;;  %v456_v3 = vunpack.c.l.b16 %v249_v57  ;;  %v1076_v49 = vld [vmem:[%s1738_s1] sm:$0xff] }
  0x29   : > { %v350_v41 = vsel %vm290_vm1, %v345_v39, %v349_v40  ;;  %v413_v52 = vshll.u32 %v404_v46, 16  ;;  %v428_v54 = vrot.slane %v404_v46, 1  ;;  %v411_v58 = vor.u32 %v410_v51, %v406_v50  ;;  %v1077_v46 = vld [vmem:[%s1738_s1 + $0x8] sm:$0xff] }
  0x2a   : > { %v296_v63 = vrot.slane %v294_v56, 1  ;;  %v299_v2 = vshll.u32 %v285_v55, 16  ;;  %v281_v8 = vunpack.c.l.b16 %v234_v61  ;;  %v457_v11 = vpack.c.b16 %v456_v3, %v456_v3 }
  0x2b   : > { %v415_v59 = vrot.slane %v413_v52, 1  ;;  %v429_v60 = vsel %vm361_vm0, %v427_v53, %v428_v54  ;;  %v461_v12 = vshll.u32 %v1075_v5, 16  ;;  %v306_v14 = vshll.u32 %v1520_v7, 16 }
  0x2c   : > { %355 = vrot.lane.b32.xlu0 %v1482_v34, %s1342_s28  ;;  %v297_v9 = vor.u32 %v296_v63, %v292_v62  ;;  %v301_v10 = vrot.slane %v299_v2, 1  ;;  %v286_v13 = vpack.c.b16 %v281_v8, %v281_v8  ;;  %v459_v16 = vshrl.u32 %v1075_v5, 16 }
  0x2d   : > { %421 = vrot.lane.b32.xlu1 %v1486_v38, %s1343_s29  ;;  %v416_v6 = vsel %vm290_vm1, %v411_v58, %v415_v59  ;;  %v463_v17 = vrot.slane %v461_v12, 1  ;;  %v466_v18 = vshll.u32 %v457_v11, 16  ;;  %v304_v19 = vshrl.u32 %v1520_v7, 16 }
  0x2e   : > { %357 = vrot.lane.b32.xlu2 %v1486_v38, %s1342_s28  ;;  %v302_v15 = vsel %vm290_vm1, %v297_v9, %v301_v10  ;;  %v308_v20 = vrot.slane %v306_v14, 1  ;;  %v311_v22 = vshll.u32 %v286_v13, 16  ;;  %v365_v28 = vrot.slane %v1520_v7, 1 }
  0x2f   : > { %v464_v23 = vor.u32 %v463_v17, %v459_v16  ;;  %v468_v24 = vrot.slane %v466_v18, 1  ;;  %v366_v29 = vrot.slane %v286_v13, 1  ;;  %v362_v32 = vrot.slane %v1504_v48, 1 }
  0x30   : > { %v313_v26 = vrot.slane %v311_v22, 1  ;;  %v363_v35 = vrot.slane %v285_v55, 1  ;;  %v480_v37 = vrot.slane %v1075_v5, 1  ;;  %v481_v39 = vrot.slane %v457_v11, 1 }
  0x31   : > { %v469_v27 = vsel %vm290_vm1, %v464_v23, %v468_v24  ;;  %v367_v31 = vsel %vm361_vm0, %v365_v28, %v366_v29 }
  0x32   : > { %v364_v36 = vsel %vm361_vm0, %v362_v32, %v363_v35  ;;  %v482_v40 = vsel %vm361_vm0, %v480_v37, %v481_v39 }
  0x34   : > { %474 = vrot.lane.b32.xlu0 %v350_v41, %s1344_s4 }
  0x35   : > { %383 = vrot.lane.b32.xlu1 %v1477_v33, %s1339_s21 }
  0x36   : > { %385 = vrot.lane.b32.xlu2 %v376_v25, %s1339_s21 }
  0x3c   : > { %359 = vrot.lane.b32.xlu0 %v350_v41, %s1342_s28 }
  0x3d   : > { %400 = vrot.lane.b32.xlu1 %v1074_v44, %s1337_s11 }
  0x3e   : > { %423 = vrot.lane.b32.xlu2 %v350_v41, %s1343_s29  ;;  %v585_v41 = vld [vmem:[%s1738_s1 + $0x10] sm:$0x3] }
  0x3f   : > { %v599_v43 = vunpack.c.l.b16 %v585_v41 }
  0x44   : > { %398 = vrot.lane.b32.xlu0 %v1453_v4, %s1337_s11 }
  0x45   : > { %436 = vrot.lane.b32.xlu1 %v376_v25, %s1341_s27  ;;  %v309_v25 = vor.u32 %v308_v20, %v304_v19 }
  0x46   : > { %438 = vrot.lane.b32.xlu2 %v429_v60, %s1341_s27 }
  0x47   : > { %v314_v30 = vsel %vm290_vm1, %v309_v25, %v313_v26 }
  0x4c   : > { %425 = vrot.lane.b32.xlu0 %v416_v6, %s1343_s29 }
  0x4d   : > { %453 = vrot.lane.b32.xlu1 %v1075_v5, %s1338_s20 }
  0x4e   : > { %351 = vrot.lane.b32.xlu2 %v302_v15, %s1342_s28 }
  0x54   : > { %451 = vrot.lane.b32.xlu0 %v1074_v44, %s1338_s20  ;;  %v602_v44 = vpack.c.b16 %v599_v43, %v599_v43 }
  0x55   : > { %476 = vrot.lane.b32.xlu1 %v416_v6, %s1344_s4 }
  0x56   : > { %478 = vrot.lane.b32.xlu2 %v469_v27, %s1344_s4  ;;  %v618_v45 = vsel %vm616_vm2, %v602_v44, 0 }
  0x57   : > { %1109 = vmatpush.bf16.msra.mxu2 %v618_v45  ;;  %1110 = vmatpush.bf16.msra.mxu3 %v618_v45 }
  0x58   : > { %625 = vmatpush.bf16.msra.mxu0 %v618_v45  ;;  %1108 = vmatpush.bf16.msra.mxu1 %v618_v45 }
  0x5b   : > { %1112 = vmatpush.bf16.msra.mxu2 %v1077_v46  ;;  %1113 = vmatpush.bf16.msra.mxu3 %v1077_v46 }
  0x5c   : > { %353 = vrot.lane.b32.xlu0 %v314_v30, %s1342_s28  ;;  %626 = vmatpush.bf16.msra.mxu0 %v1077_v46 }
  0x5d   : > { %379 = vrot.lane.b32.xlu1 %v367_v31, %s1339_s21  ;;  %1111 = vmatpush.bf16.msra.mxu1 %v1077_v46 }
  0x5e   : > { %489 = vrot.lane.b32.xlu2 %v429_v60, %s1340_s24 }
  0x5f   : > { %1115 = vmatpush.bf16.msra.mxu2 %v1076_v49  ;;  %1116 = vmatpush.bf16.msra.mxu3 %v1076_v49 }
  0x60   : > { %627 = vmatpush.bf16.msra.mxu0 %v1076_v49 }
  0x61   : > { %1114 = vmatpush.bf16.msra.mxu1 %v1076_v49 }
  0x64   : > { %377 = vrot.lane.b32.xlu0 %v364_v36, %s1339_s21  ;;  %s208_s21 = sand.u32 1, %s1311_s13  }
  0x65   : > { %392 = vrot.lane.b32.xlu1 %v1520_v7, %s1337_s11  ;;  %s875_s10 = scalar_lea.sflag [#allocation3], %s208_s21 }
  0x66   : > { %394 = vrot.lane.b32.xlu2 %v1449_v1, %s1337_s11 }
  0x6c   : > { %491 = vrot.lane.b32.xlu0 %v482_v40, %s1340_s24 }
  0x6d   : > { %419 = vrot.lane.b32.xlu1 %v1482_v34, %s1343_s29 }
  0x6e   : > { %430 = vrot.lane.b32.xlu2 %v367_v31, %s1341_s27 }
  0x74   : > { %417 = vrot.lane.b32.xlu0 %v314_v30, %s1343_s29  ;;  %s1078_s29 = smul.u32 10, %s1319_s15 }
  0x75   : > { %445 = vrot.lane.b32.xlu1 %v1449_v1, %s1338_s20 }
  0x76   : > { %447 = vrot.lane.b32.xlu2 %v1446_v0, %s1338_s20 }
  0x78   : > { %v450_v42 = vpop.permute.xlu2 %449 }
  0x7c   : > { %432 = vrot.lane.b32.xlu0 %v1467_v21, %s1341_s27 }
  0x7d   : > { %472 = vrot.lane.b32.xlu1 %v1486_v38, %s1344_s4 }
  0x7e   : > { %483 = vrot.lane.b32.xlu2 %v1467_v21, %s1340_s24 }
  0x80   : > { %v435_v47 = vpop.permute.xlu2 %434 }
  0x84   : > { %470 = vrot.lane.b32.xlu0 %v1482_v34, %s1344_s4  ;;  %s1119_s4 = smul.u32 40, %s1323_s16 }
  0x86   : > { %s888_s5 = sadd.s32 %s1119_s4, %s1078_s29  ;;  %s1261_s4 = scalar_lea.hbm %s1740_s3, 320 }
  0x87   : > { %s1065_s15 = sshll.u32 %s888_s5, 2 }
  0x88   : > { %v358_v21 = vpop.permute.xlu2 %357  ;;  %s890_s7 = scalar_lea.hbm %s1740_s3, %s1065_s15 }
  0x89   : > { %v501_v10 = vsel %vm493_vm3, %v1446_v0, %v358_v21  ;;  %s893_s9 = sshll.u32 %s890_s7, 4  ;;  %s894_s9 = int_to_ptr.hbm [resolvable:$true] %s893_s9 }
  0x8a   : > { %s1255_s11 = sshra.s32 %s894_s9, 4  ;;  %s1256_s11 = int_to_ptr.hbm [resolvable:$true] %s1255_s11 }
  0x8b   : > { %s1257_s20 = scalar_lea.hbm %s1256_s11, 40  ;;  %p1262_p2 = scmp.lt.s32.totalorder %s1256_s11, %s1740_s3 }
  0x8c   : > { %485 = vrot.lane.b32.xlu0 %v1477_v33, %s1340_s24  ;;  %s1117_s24 = smul.u32 40, %s208_s21  ;;  %p1258_p13 = scmp.ne.s32.totalorder %s1256_s11, %s1257_s20 }
  0x8d   : > { %p1263_p4 = scmp.lt.s32.totalorder %s1261_s4, %s1257_s20 }
  0x8e   : > { %s1638_s27 = scalar_lea.vmem [#allocation2], %s1117_s24  ;;  %p1259_p0 = pnand %p1258_p13, %p1417_p3 }
  0x8f   : > { %v397_v38 = vpop.permute.xlu1 %396  ;;  %s891_s8 = sshll.u32 %s1638_s27, 4  ;;  %p1264_p5 = por %p1263_p4, %p1262_p2  ;;  %s892_s8 = int_to_ptr.vmem [resolvable:$true] %s891_s8 }
  0x90   : > { %v386_v50 = vpop.permute.xlu2 %385  ;;  %p1260_p1 = pneg %p1259_p0 }
  0x92   : > { %p1265_p6 = pnand %p1264_p5, %p1260_p1 }
  0x96   : > { %v382_v51 = vpop.permute.xlu0 %381 }
  0x97   : > { %v488_v52 = vpop.permute.xlu1 %487 }
  0x98   : > { %v424_v53 = vpop.permute.xlu2 %423 }
  0x9e   : > { %v356_v54 = vpop.permute.xlu0 %355 }
  0x9f   : > { %v499_v34 = vsel %vm493_vm3, %v1449_v1, %v356_v54  ;;  %v422_v56 = vpop.permute.xlu1 %421 }
  0xa0   : > { %v510_v55 = vsel %vm504_vm4, %v499_v34, %v382_v51  ;;  %v439_v61 = vpop.permute.xlu2 %438 }
  0xa1   : > { %v521_v57 = vsel %vm515_vm5, %v510_v55, %v397_v38 }
  0xa2   : > { %v532_v33 = vsel %vm526_vm6, %v521_v57, %v422_v56 }
  0xa3   : > { %v543_v58 = vsel %vm537_vm7, %v532_v33, %v435_v47 }
  0xa4   : > { %v554_v59 = vsel %vm548_vm8, %v543_v58, %v450_v42 }
  0xa6   : > { %v475_v60 = vpop.permute.xlu0 %474 }
  0xa7   : > { %v565_v1 = vsel %vm559_vm9, %v554_v59, %v475_v60  ;;  %v384_v62 = vpop.permute.xlu1 %383  ;;  %v1627_v60 = vld [vmem:[%s1739_s2] ss:$0 sm:$0xff] }
  0xa8   : > { %v576_v63 = vsel %vm570_vm10, %v565_v1, %v488_v52  ;;  %v352_v5 = vpop.permute.xlu2 %351  ;;  %v512_v12 = vsel %vm504_vm4, %v501_v10, %v384_v62 }
  0xa9   : > { %1051 = vmatmul.msk.bf16.vlgmr.msra.gmra.mxu2 %vm605_vm11, %v576_v63  ;;  %v495_v35 = vsel %vm493_vm3, %v1504_v48, %v352_v5 }
  0xae   : > { %v360_v2 = vpop.permute.xlu0 %359 }
  0xaf   : > { %v401_v3 = vpop.permute.xlu1 %400  ;;  %v503_v0 = vsel %vm493_vm3, %v1453_v4, %v360_v2 }
  0xb0   : > { %v479_v9 = vpop.permute.xlu2 %478  ;;  %v514_v28 = vsel %vm504_vm4, %v503_v0, %v386_v50 }
  0xb1   : > { %v525_v31 = vsel %vm515_vm5, %v514_v28, %v401_v3 }
  0xb6   : > { %v399_v6 = vpop.permute.xlu0 %398 }
  0xb7   : > { %v437_v8 = vpop.permute.xlu1 %436  ;;  %v523_v13 = vsel %vm515_vm5, %v512_v12, %v399_v6 }
  0xb8   : > { %v534_v15 = vsel %vm526_vm6, %v523_v13, %v424_v53  ;;  %v490_v16 = vpop.permute.xlu2 %489 }
  0xb9   : > { %v545_v17 = vsel %vm537_vm7, %v534_v15, %v437_v8 }
  0xbe   : > { %v426_v11 = vpop.permute.xlu0 %425 }
  0xbf   : > { %v454_v14 = vpop.permute.xlu1 %453  ;;  %v536_v32 = vsel %vm526_vm6, %v525_v31, %v426_v11 }
  0xc0   : > { %v395_v26 = vpop.permute.xlu2 %394 }
  0xc6   : > { %v452_v18 = vpop.permute.xlu0 %451 }
  0xc7   : > { %v556_v19 = vsel %vm548_vm8, %v545_v17, %v452_v18  ;;  %v477_v20 = vpop.permute.xlu1 %476 }
  0xc8   : > { %v567_v22 = vsel %vm559_vm9, %v556_v19, %v477_v20  ;;  %v431_v44 = vpop.permute.xlu2 %430 }
  0xc9   : > { %v578_v23 = vsel %vm570_vm10, %v567_v22, %v490_v16 }
  0xca   : > { %1052 = vmatmul.msk.bf16.gmra.mxu2 %vm605_vm11, %v578_v23 }
  0xce   : > { %v354_v24 = vpop.permute.xlu0 %353 }
  0xcf   : > { %v497_v25 = vsel %vm493_vm3, %v1520_v7, %v354_v24  ;;  %v380_v27 = vpop.permute.xlu1 %379  ;;  %v547_v7 = vsel %vm537_vm7, %v536_v32, %v439_v61 }
  0xd0   : > { %v508_v29 = vsel %vm504_vm4, %v497_v25, %v380_v27  ;;  %v558_v40 = vsel %vm548_vm8, %v547_v7, %v454_v14  ;;  %v448_v46 = vpop.permute.xlu2 %447 }
  0xd1   : > { %v519_v30 = vsel %vm515_vm5, %v508_v29, %v395_v26  ;;  %v569_v41 = vsel %vm559_vm9, %v558_v40, %v479_v9 }
  0xd6   : > { %v378_v4 = vpop.permute.xlu0 %377 }
  0xd7   : > { %v506_v36 = vsel %vm504_vm4, %v495_v35, %v378_v4  ;;  %v393_v37 = vpop.permute.xlu1 %392 }
  0xd8   : > { %v517_v39 = vsel %vm515_vm5, %v506_v36, %v393_v37  ;;  %v484_v50 = vpop.permute.xlu2 %483 }
  0xde   : > { %v492_v42 = vpop.permute.xlu0 %491 }
  0xdf   : > { %v580_v43 = vsel %vm570_vm10, %v569_v41, %v492_v42  ;;  %v420_v48 = vpop.permute.xlu1 %419 }
  0xe0   : > { %1053 = vmatmul.msk.bf16.vlgmr.msra.gmra.mxu3 %vm605_vm11, %v580_v43  ;;  %v530_v53 = vsel %vm526_vm6, %v519_v30, %v420_v48 }
  0xe6   : > { %v418_v45 = vpop.permute.xlu0 %417 }
  0xe7   : > { %v528_v49 = vsel %vm526_vm6, %v517_v39, %v418_v45  ;;  %v446_v21 = vpop.permute.xlu1 %445 }
  0xe8   : > { %v539_v38 = vsel %vm537_vm7, %v528_v49, %v431_v44 }
  0xe9   : > { %v550_v51 = vsel %vm548_vm8, %v539_v38, %v446_v21 }
  0xee   : > { %v433_v47 = vpop.permute.xlu0 %432 }
  0xef   : > { %v541_v34 = vsel %vm537_vm7, %v530_v53, %v433_v47  ;;  %v473_v57 = vpop.permute.xlu1 %472 }
  0xf0   : > { %v552_v56 = vsel %vm548_vm8, %v541_v34, %v448_v46 }
  0xf1   : > { %v563_v33 = vsel %vm559_vm9, %v552_v56, %v473_v57 }
  0xf6   : > { %v471_v52 = vpop.permute.xlu0 %470 }
  0xf7   : > { %v561_v54 = vsel %vm559_vm9, %v550_v51, %v471_v52 }
  0xf8   : > { %v572_v55 = vsel %vm570_vm10, %v561_v54, %v484_v50 }
  0xf9   : > { %1049 = vmatmul.msk.bf16.vlgmr.msra.gmra.mxu0 %vm605_vm11, %v572_v55 }
  0xfe   : > { %v486_v58 = vpop.permute.xlu0 %485 }
  0xff   : > { %v574_v59 = vsel %vm570_vm10, %v563_v33, %v486_v58 }
 0x100   : > { %1050 = vmatmul.msk.bf16.vlgmr.msra.gmra.mxu1 %vm605_vm11, %v574_v59 }
 0x12c   : > { %v639_v1 = vpop.f32.mrf.mxu2 }
 0x12d   : > { %v640_v61 = vadd.f32 %v1627_v60, %v639_v1 }
 0x12f   : > { %v1058_v62 = vmul.f32 -1.442695, %v640_v61 }
 0x131   : > { %1201 = vpow2.f32 %v1058_v62 }
 0x134   : > { %v641_v63 = vpop.f32.mrf.mxu2 }
 0x135   : > { %v642_v2 = vadd.f32 %v1627_v60, %v641_v63 }
 0x137   : > { %v1202_v3 = vpop.eup %1201  ;;  %v1059_v5 = vmul.f32 -1.442695, %v642_v2 }
 0x138   : > { %v688_v6 = vadd.f32 1.0, %v1202_v3 }
 0x139   : > { %1203 = vpow2.f32 %v1059_v5 }
 0x13a   : > { %1205 = vrcp.f32 %v688_v6  ;;  %v765_v17 = vand.u32 2147483648, %v688_v6  ;;  %vm759_vm13 = vweird.f32 %v688_v6  ;;  %v763_v18 = vand.u32 2147483647, %v688_v6 }
 0x13c   : > { %v766_v24 = vor.u32 1.1754944e-38, %v765_v17  ;;  %vm764_vm0 = vcmp.eq.f32.partialorder %v763_v18, 8.507059e+37 }
 0x13f   : > { %v1204_v8 = vpop.eup %1203 }
 0x140   : > { %v1206_v9 = vpop.eup %1205  ;;  %v689_v10 = vadd.f32 1.0, %v1204_v8 }
 0x141   : > { %v755_v11 = vmul.f32 %v1206_v9, %v688_v6  ;;  %vm760_vm12 = vweird.f32 %v1206_v9 }
 0x142   : > { %1207 = vrcp.f32 %v689_v10  ;;  %vm761_vm14 = vmor %vm759_vm13, %vm760_vm12  ;;  %v780_v20 = vand.u32 2147483648, %v689_v10  ;;  %v778_v0 = vand.u32 2147483647, %v689_v10  ;;  %vm774_vm1 = vweird.f32 %v689_v10 }
 0x143   : > { %v756_v12 = vsub.f32 1.0, %v755_v11 }
 0x144   : > { %v781_v29 = vor.u32 1.1754944e-38, %v780_v20  ;;  %vm779_vm3 = vcmp.eq.f32.partialorder %v778_v0, 8.507059e+37 }
 0x145   : > { %v757_v13 = vmul.f32 %v1206_v9, %v756_v12 }
 0x147   : > { %v758_v15 = vadd.f32 %v1206_v9, %v757_v13 }
 0x148   : > { %v1208_v14 = vpop.eup %1207 }
 0x149   : > { %v770_v16 = vmul.f32 %v1208_v14, %v689_v10  ;;  %v762_v22 = vsel %vm761_vm14, %v1206_v9, %v758_v15  ;;  %vm775_vm15 = vweird.f32 %v1208_v14 }
 0x14a   : > { %v767_v28 = vsel %vm764_vm0, %v766_v24, %v762_v22  ;;  %vm776_vm2 = vmor %vm774_vm1, %vm775_vm15 }
 0x14b   : > { %v771_v19 = vsub.f32 1.0, %v770_v16  ;;  %v848_v35 = vmul.f32 %v767_v28, %v640_v61 }
 0x14d   : > { %v772_v23 = vmul.f32 %v1208_v14, %v771_v19  ;;  %v644_v25 = vpop.f32.mrf.mxu2 }
 0x14e   : > { %v1633_v27 = vadd.f32 %v1627_v60, %v644_v25 }
 0x14f   : > { %v773_v26 = vadd.f32 %v1208_v14, %v772_v23 }
 0x150   : > { %v1060_v31 = vmul.f32 -1.442695, %v1633_v27 }
 0x151   : > { %v777_v30 = vsel %vm776_vm2, %v1208_v14, %v773_v26 }
 0x152   : > { %v782_v32 = vsel %vm779_vm3, %v781_v29, %v777_v30  ;;  %1209 = vpow2.f32 %v1060_v31 }
 0x153   : > { %v849_v4 = vmul.f32 %v782_v32, %v642_v2 }
 0x155   : > { %v1092_v36 = vpack.c.bf16 %v849_v4, %v848_v35  ;;  %v646_v7 = vpop.f32.mrf.mxu2 }
 0x156   : > { %v647_v37 = vadd.f32 %v1627_v60, %v646_v7 }
 0x157   : > { %1105 = vst [vmem:[%s1638_s27 + $0x10] sm:$0xff] %v1092_v36  }
 0x158   : > { %v1210_v39 = vpop.eup %1209  ;;  %v1061_v40 = vmul.f32 -1.442695, %v647_v37 }
 0x159   : > { %v690_v41 = vadd.f32 1.0, %v1210_v39 }
 0x15a   : > { %1211 = vpow2.f32 %v1061_v40 }
 0x15b   : > { %1213 = vrcp.f32 %v690_v41  ;;  %v795_v53 = vand.u32 2147483648, %v690_v41  ;;  %vm789_vm5 = vweird.f32 %v690_v41  ;;  %v793_v34 = vand.u32 2147483647, %v690_v41 }
 0x15d   : > { %v796_v61 = vor.u32 1.1754944e-38, %v795_v53  ;;  %vm794_vm8 = vcmp.eq.f32.partialorder %v793_v34, 8.507059e+37 }
 0x160   : > { %v1212_v42 = vpop.eup %1211 }
 0x161   : > { %v1214_v43 = vpop.eup %1213  ;;  %v691_v44 = vadd.f32 1.0, %v1212_v42 }
 0x162   : > { %v785_v45 = vmul.f32 %v1214_v43, %v690_v41  ;;  %vm790_vm4 = vweird.f32 %v1214_v43 }
 0x163   : > { %v649_v48 = vpop.f32.mrf.mxu3  ;;  %1215 = vrcp.f32 %v691_v44  ;;  %vm791_vm6 = vmor %vm789_vm5, %vm790_vm4  ;;  %v810_v56 = vand.u32 2147483648, %v691_v44  ;;  %v808_v1 = vand.u32 2147483647, %v691_v44  ;;  %vm804_vm9 = vweird.f32 %v691_v44 }
 0x164   : > { %v786_v46 = vsub.f32 1.0, %v785_v45  ;;  %v1643_v47 = vadd.f32 %v1627_v60, %v649_v48 }
 0x165   : > { %v811_v3 = vor.u32 1.1754944e-38, %v810_v56  ;;  %vm809_vm11 = vcmp.eq.f32.partialorder %v808_v1, 8.507059e+37 }
 0x166   : > { %v787_v49 = vmul.f32 %v1214_v43, %v786_v46  ;;  %v1062_v21 = vmul.f32 -1.442695, %v1643_v47 }
 0x168   : > { %1217 = vpow2.f32 %v1062_v21  ;;  %v788_v50 = vadd.f32 %v1214_v43, %v787_v49 }
 0x169   : > { %v1216_v38 = vpop.eup %1215 }
 0x16a   : > { %v800_v51 = vmul.f32 %v1216_v38, %v691_v44  ;;  %v792_v58 = vsel %vm791_vm6, %v1214_v43, %v788_v50  ;;  %vm805_vm7 = vweird.f32 %v1216_v38 }
 0x16b   : > { %v651_v52 = vpop.f32.mrf.mxu3  ;;  %v797_v2 = vsel %vm794_vm8, %v796_v61, %v792_v58  ;;  %vm806_vm10 = vmor %vm804_vm9, %vm805_vm7 }
 0x16c   : > { %v1647_v54 = vadd.f32 %v1627_v60, %v651_v52  ;;  %v801_v55 = vsub.f32 1.0, %v800_v51  ;;  %v850_v8 = vmul.f32 %v797_v2, %v1633_v27 }
 0x16e   : > { %v1063_v57 = vmul.f32 -1.442695, %v1647_v54  ;;  %v1218_v33 = vpop.eup %1217  ;;  %v802_v59 = vmul.f32 %v1216_v38, %v801_v55 }
 0x16f   : > { %v692_v62 = vadd.f32 1.0, %v1218_v33 }
 0x170   : > { %1219 = vpow2.f32 %v1063_v57  ;;  %v803_v63 = vadd.f32 %v1216_v38, %v802_v59 }
 0x171   : > { %1221 = vrcp.f32 %v692_v62  ;;  %v825_v28 = vand.u32 2147483648, %v692_v62  ;;  %vm819_vm13 = vweird.f32 %v692_v62  ;;  %v823_v31 = vand.u32 2147483647, %v692_v62 }
 0x172   : > { %v807_v5 = vsel %vm806_vm10, %v1216_v38, %v803_v63 }
 0x173   : > { %v812_v6 = vsel %vm809_vm11, %v811_v3, %v807_v5  ;;  %v826_v40 = vor.u32 1.1754944e-38, %v825_v28  ;;  %vm824_vm0 = vcmp.eq.f32.partialorder %v823_v31, 8.507059e+37 }
 0x174   : > { %v851_v9 = vmul.f32 %v812_v6, %v647_v37 }
 0x176   : > { %v1220_v10 = vpop.eup %1219  ;;  %v629_v11 = vpop.f32.mrf.mxu0  ;;  %v1097_v12 = vpack.c.bf16 %v851_v9, %v850_v8 }
 0x177   : > { %v693_v13 = vadd.f32 1.0, %v1220_v10  ;;  %v1652_v14 = vadd.f32 %v1627_v60, %v629_v11  ;;  %v1222_v15 = vpop.eup %1221 }
 0x178   : > { %1106 = vst [vmem:[%s1638_s27 + $0x18] sm:$0xff] %v1097_v12   ;;  %v815_v16 = vmul.f32 %v1222_v15, %v692_v62  ;;  %vm820_vm12 = vweird.f32 %v1222_v15 }
 0x179   : > { %1223 = vrcp.f32 %v693_v13  ;;  %v1054_v17 = vmul.f32 -1.442695, %v1652_v14  ;;  %vm1664_vm14 = vmor %vm819_vm13, %vm820_vm12  ;;  %v840_v4 = vand.u32 2147483648, %v693_v13  ;;  %v838_v39 = vand.u32 2147483647, %v693_v13 }
 0x17a   : > { %v816_v18 = vsub.f32 1.0, %v815_v16  ;;  %vm834_vm1 = vweird.f32 %v693_v13 }
 0x17b   : > { %1225 = vpow2.f32 %v1054_v17  ;;  %v841_v45 = vor.u32 1.1754944e-38, %v840_v4  ;;  %vm839_vm3 = vcmp.eq.f32.partialorder %v838_v39, 8.507059e+37 }
 0x17c   : > { %v817_v19 = vmul.f32 %v1222_v15, %v816_v18 }
 0x17d   : > { %v634_v20 = vpop.f32.mrf.mxu1 }
 0x17e   : > { %v1657_v22 = vadd.f32 %v1627_v60, %v634_v20  ;;  %v631_v23 = vpop.f32.mrf.mxu0  ;;  %v818_v25 = vadd.f32 %v1222_v15, %v817_v19 }
 0x17f   : > { %v1224_v0 = vpop.eup %1223  ;;  %v1660_v24 = vadd.f32 %v1627_v60, %v631_v23 }
 0x180   : > { %v830_v26 = vmul.f32 %v1224_v0, %v693_v13  ;;  %v1056_v27 = vmul.f32 -1.442695, %v1657_v22  ;;  %v822_v7 = vsel %vm1664_vm14, %v1222_v15, %v818_v25  ;;  %vm835_vm15 = vweird.f32 %v1224_v0 }
 0x181   : > { %v1055_v29 = vmul.f32 -1.442695, %v1660_v24  ;;  %v1226_v30 = vpop.eup %1225  ;;  %v827_v44 = vsel %vm824_vm0, %v826_v40, %v822_v7  ;;  %vm836_vm2 = vmor %vm834_vm1, %vm835_vm15 }
 0x182   : > { %v831_v32 = vsub.f32 1.0, %v830_v26  ;;  %1227 = vpow2.f32 %v1056_v27  ;;  %v684_v36 = vadd.f32 1.0, %v1226_v30  ;;  %v852_v51 = vmul.f32 %v827_v44, %v1643_v47 }
 0x183   : > { %1229 = vpow2.f32 %v1055_v29 }
 0x184   : > { %v832_v37 = vmul.f32 %v1224_v0, %v831_v32  ;;  %1231 = vrcp.f32 %v684_v36  ;;  %v705_v62 = vand.u32 2147483648, %v684_v36  ;;  %vm699_vm5 = vweird.f32 %v684_v36 }
 0x185   : > { %v636_v41 = vpop.f32.mrf.mxu1  ;;  %v703_v2 = vand.u32 2147483647, %v684_v36 }
 0x186   : > { %v833_v42 = vadd.f32 %v1224_v0, %v832_v37  ;;  %v1671_v43 = vadd.f32 %v1627_v60, %v636_v41  ;;  %v706_v11 = vor.u32 1.1754944e-38, %v705_v62 }
 0x187   : > { %vm704_vm8 = vcmp.eq.f32.partialorder %v703_v2, 8.507059e+37 }
 0x188   : > { %v1228_v48 = vpop.eup %1227  ;;  %v837_v46 = vsel %vm836_vm2, %v1224_v0, %v833_v42  ;;  %v1057_v49 = vmul.f32 -1.442695, %v1671_v43 }
 0x189   : > { %v1230_v21 = vpop.eup %1229  ;;  %v842_v38 = vsel %vm839_vm3, %v841_v45, %v837_v46  ;;  %v1674_v50 = vadd.f32 1.0, %v1228_v48 }
 0x18a   : > { %v853_v52 = vmul.f32 %v842_v38, %v1647_v54  ;;  %v685_v53 = vadd.f32 1.0, %v1230_v21  ;;  %1233 = vpow2.f32 %v1057_v49  ;;  %v1232_v60 = vpop.eup %1231 }
 0x18b   : > { %1235 = vrcp.f32 %v1674_v50  ;;  %v695_v55 = vmul.f32 %v1232_v60, %v684_v36  ;;  %vm700_vm4 = vweird.f32 %v1232_v60  ;;  %v735_v19 = vand.u32 2147483648, %v1674_v50 }
 0x18c   : > { %v1102_v34 = vpack.c.bf16 %v853_v52, %v852_v51  ;;  %1237 = vrcp.f32 %v685_v53  ;;  %v720_v5 = vand.u32 2147483648, %v685_v53  ;;  %vm701_vm6 = vmor %vm699_vm5, %vm700_vm4  ;;  %v718_v10 = vand.u32 2147483647, %v685_v53 }
 0x18d   : > { %v696_v56 = vsub.f32 1.0, %v695_v55  ;;  %vm714_vm9 = vweird.f32 %v685_v53  ;;  %vm729_vm13 = vweird.f32 %v1674_v50  ;;  %v733_v23 = vand.u32 2147483647, %v1674_v50 }
 0x18e   : > { %1107 = vst [vmem:[%s1638_s27 + $0x20] sm:$0xff] %v1102_v34   ;;  %v721_v15 = vor.u32 1.1754944e-38, %v720_v5  ;;  %vm719_vm12 = vcmp.eq.f32.partialorder %v718_v10, 8.507059e+37  ;;  %v736_v32 = vor.u32 1.1754944e-38, %v735_v19 }
 0x18f   : > { %v697_v33 = vmul.f32 %v1232_v60, %v696_v56  ;;  %vm734_vm0 = vcmp.eq.f32.partialorder %v733_v23, 8.507059e+37 }
 0x190   : > { %v1234_v57 = vpop.eup %1233 }
 0x191   : > { %v1236_v58 = vpop.eup %1235  ;;  %v687_v59 = vadd.f32 1.0, %v1234_v57  ;;  %v698_v54 = vadd.f32 %v1232_v60, %v697_v33 }
 0x192   : > { %v1238_v1 = vpop.eup %1237  ;;  %v725_v47 = vmul.f32 %v1236_v58, %v1674_v50  ;;  %vm730_vm10 = vweird.f32 %v1236_v58 }
 0x193   : > { %v710_v61 = vmul.f32 %v1238_v1, %v685_v53  ;;  %1239 = vrcp.f32 %v687_v59  ;;  %v702_v8 = vsel %vm701_vm6, %v1232_v60, %v698_v54  ;;  %vm715_vm7 = vweird.f32 %v1238_v1  ;;  %vm731_vm14 = vmor %vm729_vm13, %vm730_vm10 }
 0x194   : > { %v726_v63 = vsub.f32 1.0, %v725_v47  ;;  %v707_v16 = vsel %vm704_vm8, %v706_v11, %v702_v8  ;;  %vm716_vm11 = vmor %vm714_vm9, %vm715_vm7  ;;  %v750_v28 = vand.u32 2147483648, %v687_v59  ;;  %v748_v31 = vand.u32 2147483647, %v687_v59 }
 0x195   : > { %v711_v3 = vsub.f32 1.0, %v710_v61  ;;  %v844_v26 = vmul.f32 %v707_v16, %v1652_v14  ;;  %vm744_vm1 = vweird.f32 %v687_v59 }
 0x196   : > { %v727_v6 = vmul.f32 %v1236_v58, %v726_v63  ;;  %vm749_vm3 = vcmp.eq.f32.partialorder %v748_v31, 8.507059e+37 }
 0x197   : > { %v712_v9 = vmul.f32 %v1238_v1, %v711_v3 }
 0x198   : > { %v728_v17 = vadd.f32 %v1236_v58, %v727_v6 }
 0x199   : > { %v1240_v12 = vpop.eup %1239  ;;  %v713_v13 = vadd.f32 %v1238_v1, %v712_v9 }
 0x19a   : > { %v740_v18 = vmul.f32 %v1240_v12, %v687_v59  ;;  %v732_v29 = vsel %vm731_vm14, %v1236_v58, %v728_v17  ;;  %vm745_vm15 = vweird.f32 %v1240_v12 }
 0x19b   : > { %v717_v20 = vsel %vm716_vm11, %v1238_v1, %v713_v13  ;;  %v737_v14 = vsel %vm734_vm0, %v736_v32, %v732_v29  ;;  %vm746_vm2 = vmor %vm744_vm1, %vm745_vm15 }
 0x19c   : > { %v722_v0 = vsel %vm719_vm12, %v721_v15, %v717_v20  ;;  %v741_v25 = vsub.f32 1.0, %v740_v18  ;;  %v846_v37 = vmul.f32 %v737_v14, %v1657_v22 }
 0x19d   : > { %v845_v27 = vmul.f32 %v722_v0, %v1660_v24  ;;  %v751_v24 = vor.u32 1.1754944e-38, %v750_v28 }
 0x19e   : > { %v742_v30 = vmul.f32 %v1240_v12, %v741_v25 }
 0x19f   : > { %v1082_v35 = vpack.c.bf16 %v845_v27, %v844_v26 }
 0x1a0   : > { %v743_v4 = vadd.f32 %v1240_v12, %v742_v30 }
 0x1a1   : > { %1083 = vst [vmem:[%s1638_s27] sm:$0xff] %v1082_v35  }
 0x1a2   : > { %v747_v36 = vsel %vm746_vm2, %v1240_v12, %v743_v4 }
 0x1a3   : > { %v752_v7 = vsel %vm749_vm3, %v751_v24, %v747_v36 }
 0x1a4   : > { %v847_v39 = vmul.f32 %v752_v7, %v1671_v43 }
 0x1a6   : > { %v1087_v40 = vpack.c.bf16 %v847_v39, %v846_v37 }
 0x1a8   : > { %1104 = vst [vmem:[%s1638_s27 + $0x8] sm:$0xff] %v1087_v40  }
 0x1a9   : > { %1268 = shalt.err (!%p1265_p6)
}
 0x1aa   : > { %s1345_s21 = smov 64  }
 0x1ab   : > { %1120 = dma.vmem_to_hbm [thread:$0]  (%p1417_p3), %s892_s8, 640, %s894_s9, %s875_s10, %s1345_s21, %s1345_s21, %s1342_s28  }
 0x1ac PF: > { %p1126_p7 = scmp.ge.s32.totalorder %s1335_s19, 2  ;;  %s908_s27 = sand.u32 1, %s1307_s12  }
 0x1ad   : > { %s909_s16 = scalar_lea.sflag [#allocation3], %s908_s27 }
 0x1ae   : > { %p1123_p9 = pnand %p1126_p7, %p1426_p8 }
 0x1b0   : > { %p1124_p10 = pneg %p1123_p9 }
 0x1b2   : > { %1302 = dma.done.wait (%p1124_p10), %s909_s16, 640  }
 0x1b3   : > { %1304 = vsyncadd (%p1124_p10), %s909_s16, 4294966656  ;;  %s16_s19 = sadd.s32 1, %s1335_s19   ;;  %s1745_s12 = smov %s1311_s13 }
 0x1b4   : > { %p13_p11 = scmp.ge.s32.totalorder %s16_s19, 10   ;;  %s1746_s13 = smov %s1315_s14 }
 0x1b5   : > { %s1747_s14 = smov %s1435_s30  ;;  %s1748_s15 = smov %s1327_s17 }
 0x1b6   : > { %s1749_s16 = smov %s1331_s18  ;;  %s1750_s17 = smov %s1753_s22 }
 0x1b7   : > { %s1751_s18 = smov %s1757_s23  ;;  %15 = sbr.rel (!%p13_p11) target bundleno = 5 (0x5), region = 74 }
 0x1bc   :  { %915 = vsyncpa [#allocation3], 1 }
 0x1bd   :  { %917 = vsyncpa [#allocation3 + $0x1], 1 }

</bundles_post_ra>
